<compile_context>
chip_gen: v7x
topology: tpu7x:2x2x1
jax: 0.10.0
libtpu: 0.0.40
codegen_flags: <defaults>
</compile_context>

<pallas_src>
import jax
import jax.numpy as jnp
from jax.experimental import pallas as pl
from jax.experimental.pallas import tpu as pltpu


# --------------------------------------------------------------------------- #
# Kernel
# --------------------------------------------------------------------------- #
def _make_flash_kernel(scale):
    """Flash-attention forward body; `scale` (=1/inv_scale_factor) is baked in."""

    def kernel(q_ref, k_ref, v_ref, o_ref, m_sc, l_sc, acc_sc):
        # Blocks: q (T, bq, D), k/v (T, bk, D), o (T, bq, D); T heads per step.
        kv_idx = pl.program_id(2)

        @pl.when(kv_idx == 0)
        def _():
            m_sc[...] = jnp.full(m_sc.shape, -jnp.inf, dtype=m_sc.dtype)
            l_sc[...] = jnp.zeros(l_sc.shape, dtype=l_sc.dtype)
            acc_sc[...] = jnp.zeros(acc_sc.shape, dtype=acc_sc.dtype)

        q = q_ref[...]
        if scale != 1.0:
            # Fold the scale into Q once (O(bq*D)) instead of scaling scores.
            q = q * jnp.asarray(scale, dtype=q_ref.dtype)

        # scores = q @ k^T as a batched contraction over D (no K transpose).
        s = jnp.einsum("tqd,tkd->tqk", q, k_ref[...],
                       preferred_element_type=jnp.float32)          # (T,bq,bk)

        # Online (numerically stable) softmax update, f32 math.
        m_prev = m_sc[...]
        m_new = jnp.maximum(m_prev, jnp.max(s, axis=-1, keepdims=True))
        alpha = jnp.exp(m_prev - m_new)
        p = jnp.exp(s - m_new)
        l_sc[...] = alpha * l_sc[...] + jnp.sum(p, axis=-1, keepdims=True)
        acc_sc[...] = alpha * acc_sc[...] + jnp.einsum(
            "tqk,tkd->tqd", p.astype(v_ref.dtype), v_ref[...],
            preferred_element_type=jnp.float32)
        m_sc[...] = m_new

        # dropout with p=0.0 is the identity (not materialized).

        @pl.when(kv_idx == pl.num_programs(2) - 1)
        def _():
            inv_l = pl.reciprocal(l_sc[...], approx=True)            # EUP slot
            o_ref[...] = (acc_sc[...] * inv_l).astype(o_ref.dtype)

    return kernel


# --------------------------------------------------------------------------- #
# Sizing helpers
# --------------------------------------------------------------------------- #
def _tpu_generation_params():
    """(vmem_capacity_bytes, tensorcores_per_chip, mxu_dim) with safe fallbacks."""
    vmem_cap = 64 << 20          # conservative default (v7x per-TC VMEM)
    num_cores = 1
    mxu_dim = 256                # v6e / v7x MXU
    try:
        info = pltpu.get_tpu_info()
        vmem_cap = int(getattr(info, "vmem_capacity_bytes", vmem_cap))
    except Exception:
        pass
    try:
        kind = jax.devices()[0].device_kind.lower()
    except Exception:
        kind = ""
    if "v7" in kind or "7x" in kind:
        num_cores = 2            # megacore: two TensorCores share the grid
    if "v5 lite" in kind or "v5e" in kind or "v5lite" in kind:
        mxu_dim = 128            # v5e MXU is 128x128
    return vmem_cap, num_cores, mxu_dim


def _pick_block(dim, target):
    """Largest block <= target that is a multiple of 8 and divides dim, else dim."""
    if dim <= target:
        return dim
    b = (target // 8) * 8
    while b >= 8:
        if dim % b == 0:
            return b
        b -= 8
    return dim


def _vmem_bytes(t, bq, bk, d, itemsize):
    """Estimated per-grid-step VMEM footprint for a head batch of size t."""
    # Pipelined (double-buffered) tiles: q, k, v, o.
    tiles = 2 * t * (2 * bq * d + 2 * bk * d) * itemsize
    # Persistent scratch: m, l (T,bq,1) and acc (T,bq,D), all f32 (single copy).
    scratch = t * (2 * bq + bq * d) * 4
    # Un-double-buffered kernel intermediates: scaled-q copy, s(f32), p(f32),
    # p cast to v dtype, and the f32 partial-product tile.
    interm = t * (bq * d * itemsize + 2 * bq * bk * 4 + bq * bk * itemsize
                  + bq * d * 4)
    return tiles + scratch + interm


def _pick_head_batch(bh, n_qblk, bq, bk, d, itemsize, budget, num_cores):
    """Largest T dividing BH that fits the budget; even work split on 2-TC chips."""
    best = 1
    for t in range(1, bh + 1):
        if bh % t:
            continue
        steps = (bh // t) * n_qblk
        if num_cores > 1 and bh * n_qblk >= num_cores and steps % num_cores:
            continue                     # v7x: keep the 2 TCs evenly loaded
        if _vmem_bytes(t, bq, bk, d, itemsize) <= budget:
            best = max(best, t)
    return best


# --------------------------------------------------------------------------- #
# Wrapper
# --------------------------------------------------------------------------- #
def sdpa_pallas(query, key, value, inv_scale_factor):
    """query/key/value: (B, H, S, D).  Returns (B, H, Sq, D)."""
    B, H, Sq, D = query.shape
    Sk = key.shape[2]
    BH = B * H
    dtype = query.dtype
    itemsize = jnp.dtype(dtype).itemsize

    q = query.reshape(BH, Sq, D)
    k = key.reshape(BH, Sk, D)
    v = value.reshape(BH, Sk, D)

    vmem_cap, num_cores, mxu_dim = _tpu_generation_params()
    vmem_limit = int(min(vmem_cap * 3 // 4, 100 << 20))   # ~48 MiB v7x, ~96 MiB v5e/v6e
    budget = int(min(vmem_cap // 2, 56 << 20))            # tile budget with headroom

    bq = _pick_block(Sq, mxu_dim)       # feed the MXU M dim (256, 128 on v5e)
    bk = _pick_block(Sk, 2 * mxu_dim)
    n_qblk = Sq // bq
    n_kblk = Sk // bk

    T = _pick_head_batch(BH, n_qblk, bq, bk, D, itemsize, budget, num_cores)

    scale = float(1.0 / inv_scale_factor)                 # compile-time constant

    grid = (BH // T, n_qblk, n_kblk)
    grid_spec = pltpu.PrefetchScalarGridSpec(
        num_scalar_prefetch=0,
        grid=grid,
        in_specs=[
            pl.BlockSpec((T, bq, D), lambda h, i, j: (h, i, 0)),   # q
            pl.BlockSpec((T, bk, D), lambda h, i, j: (h, j, 0)),   # k
            pl.BlockSpec((T, bk, D), lambda h, i, j: (h, j, 0)),   # v
        ],
        out_specs=pl.BlockSpec((T, bq, D), lambda h, i, j: (h, i, 0)),
        scratch_shapes=[
            pltpu.VMEM((T, bq, 1), jnp.float32),   # m (running max)
            pltpu.VMEM((T, bq, 1), jnp.float32),   # l (running denom)
            pltpu.VMEM((T, bq, D), jnp.float32),   # acc (running numerator)
        ],
    )

    cost = pl.CostEstimate(
        flops=4 * BH * Sq * Sk * D,
        transcendentals=BH * Sq * Sk,
        bytes_accessed=(BH * Sq * D + 2 * BH * Sk * D + BH * Sq * D) * itemsize,
    )

    out = pl.pallas_call(
        _make_flash_kernel(scale),
        out_shape=jax.ShapeDtypeStruct((BH, Sq, D), dtype),
        grid_spec=grid_spec,
        compiler_params=pltpu.CompilerParams(
            dimension_semantics=("parallel", "parallel", "arbitrary"),
            vmem_limit_bytes=vmem_limit,
        ),
        cost_estimate=cost,
    )(q, k, v)

    return out.reshape(B, H, Sq, D)


# --------------------------------------------------------------------------- #
# Reference (pure JAX) and test
# --------------------------------------------------------------------------- #
def sdpa_reference(query, key, value, inv_scale_factor):
    qk = jnp.einsum("bhqd,bhkd->bhqk", query, key)
    scaled = qk / inv_scale_factor
    p = jax.nn.softmax(scaled, axis=-1)
    return jnp.einsum("bhqk,bhkd->bhqd", p, value)


if __name__ == "__main__":
    # Small attention-shaped inputs consistent with the module's batched matmuls.
    B, H, Sq, Sk, D = 2, 4, 8, 8, 32
    inv_scale_factor = float(D) ** 0.5   # exercise the scale path (module default is 1)

    rng = jax.random.PRNGKey(0)
    kq, kk, kv = jax.random.split(rng, 3)
    query = jax.random.normal(kq, (B, H, Sq, D), dtype=jnp.float32)
    key_t = jax.random.normal(kk, (B, H, Sk, D), dtype=jnp.float32)
    value = jax.random.normal(kv, (B, H, Sk, D), dtype=jnp.float32)

    out = sdpa_pallas(query, key_t, value, inv_scale_factor)
    jax.block_until_ready(out)

    ref = sdpa_reference(query, key_t, value, inv_scale_factor)
    assert out.shape == (B, H, Sq, D)
    # approx=True softmax reciprocal -> ~1e-3-level relative deviation allowed.
    assert jnp.allclose(out, ref, atol=2e-3, rtol=2e-3), "mismatch vs reference"

    print("KERNEL_OK")
</pallas_src>

<mosaic_0001>
module attributes {stable_mosaic.version = 11 : i64} {
  func.func @kernel(%arg0: i32, %arg1: i32, %arg2: i32, %arg3: memref<8x8x32xf32, #tpu.memory_space<vmem>>, %arg4: memref<8x8x32xf32, #tpu.memory_space<vmem>>, %arg5: memref<8x8x32xf32, #tpu.memory_space<vmem>>, %arg6: memref<8x8x32xf32, #tpu.memory_space<vmem>>, %arg7: memref<8x8x1xf32, #tpu.memory_space<vmem>>, %arg8: memref<8x8x1xf32, #tpu.memory_space<vmem>>, %arg9: memref<8x8x32xf32, #tpu.memory_space<vmem>>) attributes {dimension_semantics = [#tpu.dimension_semantics<parallel>, #tpu.dimension_semantics<parallel>, #tpu.dimension_semantics<arbitrary>], iteration_bounds = array<i64: 1, 1, 1>, scalar_prefetch = 0 : i64, scratch_operands = 3 : i64, tpu.core_type = #tpu.core_type<tc>, window_params = [{transform_indices = @transform_0, window_bounds = array<i64: 8, 8, 32>}, {transform_indices = @transform_1, window_bounds = array<i64: 8, 8, 32>}, {transform_indices = @transform_2, window_bounds = array<i64: 8, 8, 32>}, {transform_indices = @transform_3, window_bounds = array<i64: 8, 8, 32>}]} {
    %c0_i32 = arith.constant 0 : i32
    %0 = arith.cmpi eq, %arg2, %c0_i32 : i32
    %1 = arith.extui %0 : i1 to i32
    %c0_i32_0 = arith.constant 0 : i32
    %2 = arith.cmpi ne, %1, %c0_i32_0 : i32
    scf.if %2 {
      %cst_33 = arith.constant 0xFF800000 : f32
      %34 = vector.broadcast %cst_33 : f32 to vector<8x8x1xf32>
      %c0_34 = arith.constant 0 : index
      %c0_35 = arith.constant 0 : index
      %c0_36 = arith.constant 0 : index
      %35 = vector.load %arg7[%c0_34, %c0_35, %c0_36] : memref<8x8x1xf32, #tpu.memory_space<vmem>>, vector<8x8x1xf32>
      tpu.vector_store %arg7[%c0_34, %c0_35, %c0_36], %34 {strides = array<i32>} : memref<8x8x1xf32, #tpu.memory_space<vmem>>, vector<8x8x1xf32>,
      %cst_37 = arith.constant 0.000000e+00 : f32
      %36 = vector.broadcast %cst_37 : f32 to vector<8x8x1xf32>
      %c0_38 = arith.constant 0 : index
      %c0_39 = arith.constant 0 : index
      %c0_40 = arith.constant 0 : index
      %37 = vector.load %arg8[%c0_38, %c0_39, %c0_40] : memref<8x8x1xf32, #tpu.memory_space<vmem>>, vector<8x8x1xf32>
      tpu.vector_store %arg8[%c0_38, %c0_39, %c0_40], %36 {strides = array<i32>} : memref<8x8x1xf32, #tpu.memory_space<vmem>>, vector<8x8x1xf32>,
      %cst_41 = arith.constant 0.000000e+00 : f32
      %38 = vector.broadcast %cst_41 : f32 to vector<8x8x32xf32>
      %c0_42 = arith.constant 0 : index
      %c0_43 = arith.constant 0 : index
      %c0_44 = arith.constant 0 : index
      %39 = vector.load %arg9[%c0_42, %c0_43, %c0_44] : memref<8x8x32xf32, #tpu.memory_space<vmem>>, vector<8x8x32xf32>
      tpu.vector_store %arg9[%c0_42, %c0_43, %c0_44], %38 {strides = array<i32>} : memref<8x8x32xf32, #tpu.memory_space<vmem>>, vector<8x8x32xf32>,
    } else {
    }
    %c0 = arith.constant 0 : index
    %c0_1 = arith.constant 0 : index
    %c0_2 = arith.constant 0 : index
    %3 = vector.load %arg3[%c0, %c0_1, %c0_2] : memref<8x8x32xf32, #tpu.memory_space<vmem>>, vector<8x8x32xf32>
    %cst = arith.constant 0.176776692 : f32
    %4 = vector.broadcast %cst : f32 to vector<8x8x32xf32>
    %5 = arith.mulf %3, %4 : vector<8x8x32xf32>
    %c0_3 = arith.constant 0 : index
    %c0_4 = arith.constant 0 : index
    %c0_5 = arith.constant 0 : index
    %6 = vector.load %arg4[%c0_3, %c0_4, %c0_5] : memref<8x8x32xf32, #tpu.memory_space<vmem>>, vector<8x8x32xf32>
    "tpu.trace_start"() <{level = 10 : i32, message = "tqd,tkd->tqk"}> : () -> ()
    %cst_6 = arith.constant dense<0.000000e+00> : vector<8x8x8xf32>
    %7 = tpu.matmul %5, %6, %cst_6 {dimension_numbers = #tpu.dot_dimension_numbers<[2], [2], [1], [1], [0, 0, 0, 1, 1, 1], [0], [0]>} : vector<8x8x32xf32>, vector<8x8x32xf32>, vector<8x8x8xf32> -> vector<8x8x8xf32>
    "tpu.trace_stop"() : () -> ()
    %c0_7 = arith.constant 0 : index
    %c0_8 = arith.constant 0 : index
    %c0_9 = arith.constant 0 : index
    %8 = vector.load %arg7[%c0_7, %c0_8, %c0_9] : memref<8x8x1xf32, #tpu.memory_space<vmem>>, vector<8x8x1xf32>
    %cst_10 = arith.constant dense<0xFF800000> : vector<8x8xf32>
    %9 = vector.multi_reduction <maximumf>, %7, %cst_10 [2] : vector<8x8x8xf32> to vector<8x8xf32>
    %10 = vector.shape_cast %9 : vector<8x8xf32> to vector<8x8x1xf32>
    %11 = arith.maximumf %8, %10 : vector<8x8x1xf32>
    %12 = arith.subf %8, %11 : vector<8x8x1xf32>
    %13 = math.exp %12 : vector<8x8x1xf32>
    %14 = vector.broadcast %11 : vector<8x8x1xf32> to vector<8x8x8xf32>
    %15 = arith.subf %7, %14 : vector<8x8x8xf32>
    %16 = math.exp %15 : vector<8x8x8xf32>
    %c0_11 = arith.constant 0 : index
    %c0_12 = arith.constant 0 : index
    %c0_13 = arith.constant 0 : index
    %17 = vector.load %arg8[%c0_11, %c0_12, %c0_13] : memref<8x8x1xf32, #tpu.memory_space<vmem>>, vector<8x8x1xf32>
    %18 = arith.mulf %13, %17 : vector<8x8x1xf32>
    %cst_14 = arith.constant dense<0.000000e+00> : vector<8x8xf32>
    %19 = vector.multi_reduction <add>, %16, %cst_14 [2] : vector<8x8x8xf32> to vector<8x8xf32>
    %20 = vector.shape_cast %19 : vector<8x8xf32> to vector<8x8x1xf32>
    %21 = arith.addf %18, %20 : vector<8x8x1xf32>
    %c0_15 = arith.constant 0 : index
    %c0_16 = arith.constant 0 : index
    %c0_17 = arith.constant 0 : index
    %22 = vector.load %arg8[%c0_15, %c0_16, %c0_17] : memref<8x8x1xf32, #tpu.memory_space<vmem>>, vector<8x8x1xf32>
    tpu.vector_store %arg8[%c0_15, %c0_16, %c0_17], %21 {strides = array<i32>} : memref<8x8x1xf32, #tpu.memory_space<vmem>>, vector<8x8x1xf32>,
    %c0_18 = arith.constant 0 : index
    %c0_19 = arith.constant 0 : index
    %c0_20 = arith.constant 0 : index
    %23 = vector.load %arg9[%c0_18, %c0_19, %c0_20] : memref<8x8x32xf32, #tpu.memory_space<vmem>>, vector<8x8x32xf32>
    %24 = vector.broadcast %13 : vector<8x8x1xf32> to vector<8x8x32xf32>
    %25 = arith.mulf %24, %23 : vector<8x8x32xf32>
    %c0_21 = arith.constant 0 : index
    %c0_22 = arith.constant 0 : index
    %c0_23 = arith.constant 0 : index
    %26 = vector.load %arg5[%c0_21, %c0_22, %c0_23] : memref<8x8x32xf32, #tpu.memory_space<vmem>>, vector<8x8x32xf32>
    "tpu.trace_start"() <{level = 10 : i32, message = "tqk,tkd->tqd"}> : () -> ()
    %cst_24 = arith.constant dense<0.000000e+00> : vector<8x8x32xf32>
    %27 = tpu.matmul %16, %26, %cst_24 {dimension_numbers = #tpu.dot_dimension_numbers<[2], [1], [1], [2], [0, 0, 0, 1, 1, 2], [0], [0]>} : vector<8x8x8xf32>, vector<8x8x32xf32>, vector<8x8x32xf32> -> vector<8x8x32xf32>
    "tpu.trace_stop"() : () -> ()
    %28 = arith.addf %25, %27 : vector<8x8x32xf32>
    %c0_25 = arith.constant 0 : index
    %c0_26 = arith.constant 0 : index
    %c0_27 = arith.constant 0 : index
    %29 = vector.load %arg9[%c0_25, %c0_26, %c0_27] : memref<8x8x32xf32, #tpu.memory_space<vmem>>, vector<8x8x32xf32>
    tpu.vector_store %arg9[%c0_25, %c0_26, %c0_27], %28 {strides = array<i32>} : memref<8x8x32xf32, #tpu.memory_space<vmem>>, vector<8x8x32xf32>,
    %c0_28 = arith.constant 0 : index
    %c0_29 = arith.constant 0 : index
    %c0_30 = arith.constant 0 : index
    %30 = vector.load %arg7[%c0_28, %c0_29, %c0_30] : memref<8x8x1xf32, #tpu.memory_space<vmem>>, vector<8x8x1xf32>
    tpu.vector_store %arg7[%c0_28, %c0_29, %c0_30], %11 {strides = array<i32>} : memref<8x8x1xf32, #tpu.memory_space<vmem>>, vector<8x8x1xf32>,
    %c0_i32_31 = arith.constant 0 : i32
    %31 = arith.cmpi eq, %arg2, %c0_i32_31 : i32
    %32 = arith.extui %31 : i1 to i32
    %c0_i32_32 = arith.constant 0 : i32
    %33 = arith.cmpi ne, %32, %c0_i32_32 : i32
    scf.if %33 {
      %c0_33 = arith.constant 0 : index
      %c0_34 = arith.constant 0 : index
      %c0_35 = arith.constant 0 : index
      %34 = vector.load %arg8[%c0_33, %c0_34, %c0_35] : memref<8x8x1xf32, #tpu.memory_space<vmem>>, vector<8x8x1xf32>
      %35 = tpu.reciprocal %34 {approx = true} : vector<8x8x1xf32> -> vector<8x8x1xf32>
      %c0_36 = arith.constant 0 : index
      %c0_37 = arith.constant 0 : index
      %c0_38 = arith.constant 0 : index
      %36 = vector.load %arg9[%c0_36, %c0_37, %c0_38] : memref<8x8x32xf32, #tpu.memory_space<vmem>>, vector<8x8x32xf32>
      %37 = vector.broadcast %35 : vector<8x8x1xf32> to vector<8x8x32xf32>
      %38 = arith.mulf %36, %37 : vector<8x8x32xf32>
      %c0_39 = arith.constant 0 : index
      %c0_40 = arith.constant 0 : index
      %c0_41 = arith.constant 0 : index
      %39 = vector.load %arg6[%c0_39, %c0_40, %c0_41] : memref<8x8x32xf32, #tpu.memory_space<vmem>>, vector<8x8x32xf32>
      tpu.vector_store %arg6[%c0_39, %c0_40, %c0_41], %38 {strides = array<i32>} : memref<8x8x32xf32, #tpu.memory_space<vmem>>, vector<8x8x32xf32>,
    } else {
    }
    return
  }
  func.func @transform_0(%arg0: i32, %arg1: i32, %arg2: i32) -> (i32, i32, i32) {
    %c0_i32 = arith.constant 0 : i32
    %c0_i32_0 = arith.constant 0 : i32
    return %arg0, %arg1, %c0_i32 : i32, i32, i32
  }
  func.func @transform_1(%arg0: i32, %arg1: i32, %arg2: i32) -> (i32, i32, i32) {
    %c0_i32 = arith.constant 0 : i32
    %c0_i32_0 = arith.constant 0 : i32
    return %arg0, %arg2, %c0_i32 : i32, i32, i32
  }
  func.func @transform_2(%arg0: i32, %arg1: i32, %arg2: i32) -> (i32, i32, i32) {
    %c0_i32 = arith.constant 0 : i32
    %c0_i32_0 = arith.constant 0 : i32
    return %arg0, %arg2, %c0_i32 : i32, i32, i32
  }
  func.func @transform_3(%arg0: i32, %arg1: i32, %arg2: i32) -> (i32, i32, i32) {
    %c0_i32 = arith.constant 0 : i32
    %c0_i32_0 = arith.constant 0 : i32
    return %arg0, %arg1, %c0_i32 : i32, i32, i32
  }
}

</mosaic_0001>

<bundles_post_ra>
// kernel: tpu_custom_call.1
= control target key start
LH: loop header
LB: loop body
LE: loop exit
PB: predicated region body
PF: predicated region fallthrough
CT: control target
= control target key end

     0   :  { %8 = vsyncpa [#allocation6], 0  ;;  %s2353_s0 = inlined_call_operand.hbm [shape: f32[8,8,32], index: 0, kind: input, shape index: {}]   ;;  %s2354_s1 = inlined_call_operand.hbm [shape: f32[8,8,32], index: 1, kind: input, shape index: {}]   ;;  %s2355_s2 = inlined_call_operand.hbm [shape: f32[8,8,32], index: 2, kind: input, shape index: {}]   ;;  %s2356_s3 = inlined_call_operand.hbm [shape: f32[8,8,32], index: 3, kind: output, shape index: {}]  }
   0x1   :  { %9 = vsyncpa [#allocation9], 0 }
   0x2   :  { %10 = vsyncpa [#allocation7], 0  ;;  %s1968_s12 = smov [#allocation8]   ;;  %s1969_s14 = smov [#allocation5]  }
   0x3   :  { %s28_s13 = sshll.u32 %s1968_s12, 4  ;;  %s16_s15 = sshll.u32 %s1969_s14, 4  ;;  %s29_s13 = int_to_ptr.vmem [resolvable:$true] %s28_s13  ;;  %s1998_s15 = int_to_ptr.vmem [resolvable:$true] %s16_s15 }
   0x4   :  { %s1874_s18 = scalar_lea.hbm %s2354_s1, 1024 }
   0x5   :  { %p1875_p0 = scmp.ne.s32.totalorder %s2354_s1, %s1874_s18  ;;  %p1878_p1 = scmp.lt.u32.totalorder %s1874_s18, %s2354_s1 }
   0x7   :  { %p1880_p2 = pnand %p1878_p1, %p1875_p0 }
   0x9   :  { %1883 = shalt.err (!%p1880_p2)
}
   0xa   :  { %s1884_s23 = scalar_lea.vmem %s29_s13, 1024  ;;  %p1889_p4 = scmp.lt.s32.totalorder %s29_s13, %s29_s13 }
   0xb   :  { %p1885_p3 = scmp.ne.s32.totalorder %s29_s13, %s1884_s23  ;;  %p1890_p5 = scmp.lt.s32.totalorder %s1884_s23, %s1884_s23 }
   0xd   :  { %p1891_p6 = por %p1890_p5, %p1889_p4 }
   0xf   :  { %p1892_p7 = pnand %p1891_p6, %p1885_p3 }
  0x11   :  { %1895 = shalt.err (!%p1892_p7)
}
  0x12   :  { %s1970_s24 = smov 128   ;;  %s1971_s25 = smov 8  }
  0x13   :  { %34 = dma.hbm_to_vmem [thread:$0]  %s2354_s1, 1024, %s29_s13, [#allocation9], %s1970_s24, %s1970_s24, %s1971_s25  }
  0x14   :  { %s1896_s30 = scalar_lea.hbm %s2353_s0, 1024 }
  0x15   :  { %p1897_p8 = scmp.ne.s32.totalorder %s2353_s0, %s1896_s30  ;;  %p1900_p9 = scmp.lt.u32.totalorder %s1896_s30, %s2353_s0 }
  0x17   :  { %p1902_p10 = pnand %p1900_p9, %p1897_p8 }
  0x19   :  { %1905 = shalt.err (!%p1902_p10)
}
  0x1a   :  { %s1906_s8 = scalar_lea.vmem %s1998_s15, 1024  ;;  %p1911_p12 = scmp.lt.s32.totalorder %s1998_s15, %s1998_s15 }
  0x1b   :  { %p1907_p11 = scmp.ne.s32.totalorder %s1998_s15, %s1906_s8  ;;  %p1912_p13 = scmp.lt.s32.totalorder %s1906_s8, %s1906_s8 }
  0x1d   :  { %p1913_p0 = por %p1912_p13, %p1911_p12 }
  0x1f   :  { %p1914_p1 = pnand %p1913_p0, %p1907_p11 }
  0x21   :  { %1917 = shalt.err (!%p1914_p1)
}
  0x22   :  { %22 = dma.hbm_to_vmem [thread:$0]  %s2353_s0, 1024, %s1998_s15, [#allocation6], %s1970_s24, %s1970_s24, %s1971_s25  }
  0x23   :  { %s1972_s10 = smov [#allocation10]   ;;  %s1918_s14 = scalar_lea.hbm %s2355_s2, 1024 }
  0x24   :  { %s40_s11 = sshll.u32 %s1972_s10, 4  ;;  %p1919_p2 = scmp.ne.s32.totalorder %s2355_s2, %s1918_s14  ;;  %s41_s11 = int_to_ptr.vmem [resolvable:$true] %s40_s11 }
  0x25   :  { %p1922_p3 = scmp.lt.u32.totalorder %s1918_s14, %s2355_s2 }
  0x27   :  { %p1924_p4 = pnand %p1922_p3, %p1919_p2 }
  0x29   :  { %1927 = shalt.err (!%p1924_p4)
}
  0x2a   :  { %s1928_s20 = scalar_lea.vmem %s41_s11, 1024  ;;  %p1933_p6 = scmp.lt.s32.totalorder %s41_s11, %s41_s11 }
  0x2b   :  { %p1929_p5 = scmp.ne.s32.totalorder %s41_s11, %s1928_s20  ;;  %p1934_p7 = scmp.lt.s32.totalorder %s1928_s20, %s1928_s20 }
  0x2d   :  { %p1935_p8 = por %p1934_p7, %p1933_p6 }
  0x2f   :  { %p1936_p9 = pnand %p1935_p8, %p1929_p5 }
  0x31   :  { %1939 = shalt.err (!%p1936_p9)
}
  0x32   :  { %46 = dma.hbm_to_vmem [thread:$0]  %s2355_s2, 1024, %s41_s11, [#allocation9], %s1970_s24, %s1970_s24, %s1971_s25  }
  0x33   :  { %1962 = dma.done.wait [#allocation6], 1024  }
  0x34   :  { %1963 = vsyncadd [#allocation6], 4294966272 }
  0x35   :  { %1964 = dma.done.wait [#allocation9], 2048  }
  0x36   :  { %1965 = vsyncadd [#allocation9], 4294965248  ;;  %vm77_vm0 = vcmask 261120   ;;  %v1973_v0 = vmov 0.0   ;;  %vm1974_vm1 = vmmov 0   ;;  %v102_v1 = vld [vmem:[#allocation8] sm:$0xff] }
  0x37   :  { %1734 = vmatprep.subr.mxu0 %v1973_v0  ;;  %78 = vst.msk [vmem:[#allocation4] sm:$0xff] %vm77_vm0, %v1973_v0  ;;  %79 = vst.msk [vmem:[#allocation4 + $0x8] sm:$0xff] %vm77_vm0, %v1973_v0  ;;  %1736 = vmatprep.mubr.msk.f32.mxu0 %vm1974_vm1, %v1973_v0  ;;  %v86_v2 = vld [vmem:[#allocation5] sm:$0xff]  ;;  %v103_v3 = vld [vmem:[#allocation8 + $0x8] sm:$0xff]  ;;  %vm60_vm2 = vcmask 7168   ;;  %v1975_v25 = vmov -inf  }
  0x38   :  { %80 = vst.msk [vmem:[#allocation4 + $0x10] sm:$0xff] %vm77_vm0, %v1973_v0  ;;  %81 = vst.msk [vmem:[#allocation4 + $0x18] sm:$0xff] %vm77_vm0, %v1973_v0  ;;  %1739 = vmatprep.subr.mxu1 %v1973_v0  ;;  %1741 = vmatprep.mubr.msk.f32.mxu1 %vm1974_vm1, %v1973_v0  ;;  %v94_v4 = vmul.f32 0.17677669, %v86_v2  ;;  %v87_v5 = vld [vmem:[#allocation5 + $0x8] sm:$0xff]  ;;  %v88_v6 = vld [vmem:[#allocation5 + $0x10] sm:$0xff] }
  0x39   :  { %82 = vst.msk [vmem:[#allocation4 + $0x20] sm:$0xff] %vm77_vm0, %v1973_v0  ;;  %83 = vst.msk [vmem:[#allocation4 + $0x28] sm:$0xff] %vm77_vm0, %v1973_v0  ;;  %1735 = vmatpush3.xpose.msk.msra.mxu0 %vm77_vm0, %v102_v1  ;;  %1740 = vmatpush3.xpose.msk.msra.mxu1 %vm77_vm0, %v103_v3  ;;  %v95_v7 = vmul.f32 0.17677669, %v87_v5  ;;  %v104_v8 = vld [vmem:[#allocation8 + $0x10] sm:$0xff]  ;;  %v89_v9 = vld [vmem:[#allocation5 + $0x18] sm:$0xff] }
  0x3a   :  { %84 = vst.msk [vmem:[#allocation4 + $0x30] sm:$0xff] %vm77_vm0, %v1973_v0  ;;  %85 = vst.msk [vmem:[#allocation4 + $0x38] sm:$0xff] %vm77_vm0, %v1973_v0  ;;  %1744 = vmatprep.subr.mxu0 %v1973_v0  ;;  %1749 = vmatprep.subr.mxu1 %v1973_v0  ;;  %v105_v10 = vld [vmem:[#allocation8 + $0x18] sm:$0xff]  ;;  %v96_v11 = vmul.f32 0.17677669, %v88_v6  ;;  %v90_v13 = vld [vmem:[#allocation5 + $0x20] sm:$0xff] }
  0x3b   :  { %v97_v12 = vmul.f32 0.17677669, %v89_v9  ;;  %v106_v14 = vld [vmem:[#allocation8 + $0x20] sm:$0xff]  ;;  %v91_v15 = vld [vmem:[#allocation5 + $0x28] sm:$0xff]  ;;  %v98_v17 = vmul.f32 0.17677669, %v90_v13 }
  0x3c   :  { %1737 = vmatmul.mubr.msk.f32.vlgmr.msra.gmra.mrb[0].mxu0 %vm77_vm0, %v94_v4  ;;  %1742 = vmatmul.mubr.msk.f32.vlgmr.msra.gmra.mrb[0].mxu1 %vm77_vm0, %v95_v7  ;;  %v107_v16 = vld [vmem:[#allocation8 + $0x28] sm:$0xff]  ;;  %v99_v18 = vmul.f32 0.17677669, %v91_v15  ;;  %v92_v19 = vld [vmem:[#allocation5 + $0x30] sm:$0xff]  ;;  %v93_v21 = vld [vmem:[#allocation5 + $0x38] sm:$0xff]  ;;  %61 = vst.msk [vmem:[#allocation2] sm:$0xff] %vm60_vm2, %v1975_v25 }
  0x3d   :  { %1745 = vmatpush3.xpose.msk.msra.mxu0 %vm77_vm0, %v104_v8  ;;  %1746 = vmatprep.mubr.msk.f32.mxu0 %vm1974_vm1, %v1973_v0  ;;  %v108_v20 = vld [vmem:[#allocation8 + $0x30] sm:$0xff]  ;;  %v109_v22 = vld [vmem:[#allocation8 + $0x38] sm:$0xff]  ;;  %v100_v23 = vmul.f32 0.17677669, %v92_v19  ;;  %v101_v24 = vmul.f32 0.17677669, %v93_v21 }
  0x3e   :  { %1750 = vmatpush3.xpose.msk.msra.mxu1 %vm77_vm0, %v105_v10  ;;  %1751 = vmatprep.mubr.msk.f32.mxu1 %vm1974_vm1, %v1973_v0  ;;  %62 = vst.msk [vmem:[#allocation2 + $0x8] sm:$0xff] %vm60_vm2, %v1975_v25  ;;  %63 = vst.msk [vmem:[#allocation2 + $0x10] sm:$0xff] %vm60_vm2, %v1975_v25  ;;  %vm727_vm3 = vcmask 64512   ;;  %v1976_v50 = vmov 0   ;;  %v962_v21 = vld [vmem:[#allocation10 + $0x8] sm:$0xff]  ;;  %s1977_s2 = smov [#allocation11]  }
  0x3f   :  { %1754 = vmatprep.subr.mxu0 %v1973_v0  ;;  %1759 = vmatprep.subr.mxu1 %v1973_v0  ;;  %64 = vst.msk [vmem:[#allocation2 + $0x18] sm:$0xff] %vm60_vm2, %v1975_v25  ;;  %65 = vst.msk [vmem:[#allocation2 + $0x20] sm:$0xff] %vm60_vm2, %v1975_v25  ;;  %s1665_s21 = sshll.u32 %s1977_s2, 4  ;;  %s1666_s21 = int_to_ptr.vmem [resolvable:$true] %s1665_s21 }
  0x40   :  { %1747 = vmatmul.mubr.msk.f32.vlgmr.msra.gmra.mrb[2].mxu0 %vm77_vm0, %v96_v11  ;;  %66 = vst.msk [vmem:[#allocation2 + $0x28] sm:$0xff] %vm60_vm2, %v1975_v25  ;;  %67 = vst.msk [vmem:[#allocation2 + $0x30] sm:$0xff] %vm60_vm2, %v1975_v25  ;;  %1824 = vset.pattern.permute.xlu0 %v1976_v50  ;;  %s1940_s22 = scalar_lea.vmem %s1666_s21, 1024  ;;  %p1945_p11 = scmp.lt.s32.totalorder %s1666_s21, %s1666_s21 }
  0x41   :  { %1752 = vmatmul.mubr.msk.f32.vlgmr.msra.gmra.mrb[2].mxu1 %vm77_vm0, %v97_v12  ;;  %1755 = vmatpush3.xpose.msk.msra.mxu0 %vm77_vm0, %v106_v14  ;;  %68 = vst.msk [vmem:[#allocation2 + $0x38] sm:$0xff] %vm60_vm2, %v1975_v25  ;;  %69 = vst.msk [vmem:[#allocation3] sm:$0xff] %vm60_vm2, %v1973_v0  ;;  %p1941_p10 = scmp.ne.s32.totalorder %s1666_s21, %s1940_s22  ;;  %p1946_p12 = scmp.lt.s32.totalorder %s1940_s22, %s1940_s22 }
  0x42   :  { %1756 = vmatprep.mubr.msk.f32.mxu0 %vm1974_vm1, %v1973_v0  ;;  %1760 = vmatpush3.xpose.msk.msra.mxu1 %vm77_vm0, %v107_v16  ;;  %70 = vst.msk [vmem:[#allocation3 + $0x8] sm:$0xff] %vm60_vm2, %v1973_v0  ;;  %71 = vst.msk [vmem:[#allocation3 + $0x10] sm:$0xff] %vm60_vm2, %v1973_v0 }
  0x43   :  { %1761 = vmatprep.mubr.msk.f32.mxu1 %vm1974_vm1, %v1973_v0  ;;  %1764 = vmatprep.subr.mxu0 %v1973_v0  ;;  %72 = vst.msk [vmem:[#allocation3 + $0x18] sm:$0xff] %vm60_vm2, %v1973_v0  ;;  %73 = vst.msk [vmem:[#allocation3 + $0x20] sm:$0xff] %vm60_vm2, %v1973_v0  ;;  %v2168_v51 = vld [vmem:[#allocation2] sm:$0xff]  ;;  %p1947_p13 = por %p1946_p12, %p1945_p11 }
  0x44   :  { %1757 = vmatmul.mubr.msk.f32.vlgmr.msra.gmra.mrb[4].mxu0 %vm77_vm0, %v98_v17  ;;  %1769 = vmatprep.subr.mxu1 %v1973_v0  ;;  %74 = vst.msk [vmem:[#allocation3 + $0x28] sm:$0xff] %vm60_vm2, %v1973_v0  ;;  %75 = vst.msk [vmem:[#allocation3 + $0x30] sm:$0xff] %vm60_vm2, %v1973_v0 }
  0x45   :  { %1762 = vmatmul.mubr.msk.f32.vlgmr.msra.gmra.mrb[4].mxu1 %vm77_vm0, %v99_v18  ;;  %1765 = vmatpush3.xpose.msk.msra.mxu0 %vm77_vm0, %v108_v20  ;;  %76 = vst.msk [vmem:[#allocation3 + $0x38] sm:$0xff] %vm60_vm2, %v1973_v0  ;;  %v2173_v54 = vld [vmem:[#allocation2 + $0x8] sm:$0xff]  ;;  %v2175_v55 = vld [vmem:[#allocation2 + $0x10] sm:$0xff]  ;;  %v961_v18 = vld [vmem:[#allocation10] sm:$0xff]  ;;  %p1948_p0 = pnand %p1947_p13, %p1941_p10 }
  0x46   :  { %1766 = vmatprep.mubr.msk.f32.mxu0 %vm1974_vm1, %v1973_v0  ;;  %1770 = vmatpush3.xpose.msk.msra.mxu1 %vm77_vm0, %v109_v22  ;;  %v2188_v61 = vld [vmem:[#allocation2 + $0x18] sm:$0xff]  ;;  %v2190_v62 = vld [vmem:[#allocation2 + $0x20] sm:$0xff] }
  0x47   :  { %1771 = vmatprep.mubr.msk.f32.mxu1 %vm1974_vm1, %v1973_v0  ;;  %1774 = vmatprep.subr.mxu0 %v1973_v0  ;;  %v2207_v6 = vld [vmem:[#allocation2 + $0x28] sm:$0xff]  ;;  %v2209_v7 = vld [vmem:[#allocation2 + $0x30] sm:$0xff] }
  0x48   :  { %1767 = vmatmul.mubr.msk.f32.vlgmr.msra.gmra.mrb[6].mxu0 %vm77_vm0, %v100_v23  ;;  %1779 = vmatprep.subr.mxu1 %v1973_v0  ;;  %v2226_v14 = vld [vmem:[#allocation2 + $0x38] sm:$0xff] }
  0x49   :  { %1772 = vmatmul.mubr.msk.f32.vlgmr.msra.gmra.mrb[6].mxu1 %vm77_vm0, %v101_v24  ;;  %1776 = vmatprep.mubr.msk.f32.mxu0 %vm1974_vm1, %v1973_v0 }
  0x4a   :  { %1781 = vmatprep.mubr.msk.f32.mxu1 %vm1974_vm1, %v1973_v0  ;;  %1825 = vset.pattern.permute.xlu1 %v1976_v50 }
  0x4b   :  { %1775 = vmatpush3.msra.mxu0 %v961_v18  ;;  %1780 = vmatpush3.msra.mxu1 %v962_v21 }
  0x4c   :  { %1784 = vmatprep.subr.mxu0 %v1973_v0  ;;  %1789 = vmatprep.subr.mxu1 %v1973_v0 }
 0x10f   :  { %v2136_v26 = vpop.f32.mrb[0].mxu0  ;;  %v2138_v27 = vpop.f32.mrb[0].mxu1 }
 0x110   :  { %v1738_v28 = vpop.f32.mrb[1].mxu0  ;;  %v728_v29 = vsel %vm727_vm3, %v2136_v26, -inf  ;;  %v1743_v30 = vpop.f32.mrb[1].mxu1  ;;  %v731_v31 = vsel %vm727_vm3, %v2138_v27, -inf }
 0x111   :  { %729 = vmax.xlane.f32.xlu0 %v728_v29 }
 0x113   :  { %v2144_v32 = vpop.f32.mrb[2].mxu0 }
 0x114   :  { %v1748_v33 = vpop.f32.mrb[3].mxu0  ;;  %v734_v34 = vsel %vm727_vm3, %v2144_v32, -inf  ;;  %v2148_v35 = vpop.f32.mrb[2].mxu1 }
 0x115   :  { %732 = vmax.xlane.f32.xlu0 %v731_v31  ;;  %735 = vmax.xlane.f32.xlu1 %v734_v34  ;;  %v1753_v36 = vpop.f32.mrb[3].mxu1  ;;  %v737_v37 = vsel %vm727_vm3, %v2148_v35, -inf }
 0x117   :  { %v2152_v38 = vpop.f32.mrb[4].mxu0 }
 0x118   :  { %v1758_v39 = vpop.f32.mrb[5].mxu0  ;;  %v740_v40 = vsel %vm727_vm3, %v2152_v38, -inf  ;;  %v2156_v41 = vpop.f32.mrb[4].mxu1 }
 0x119   :  { %738 = vmax.xlane.f32.xlu1 %v737_v37  ;;  %741 = vmax.xlane.f32.xlu0 %v740_v40  ;;  %v1763_v42 = vpop.f32.mrb[5].mxu1  ;;  %v743_v43 = vsel %vm727_vm3, %v2156_v41, -inf  ;;  %v963_v37 = vld [vmem:[#allocation10 + $0x10] sm:$0xff] }
 0x11b   :  { %v2160_v44 = vpop.f32.mrb[6].mxu0 }
 0x11c   :  { %v1768_v45 = vpop.f32.mrb[7].mxu0  ;;  %v746_v46 = vsel %vm727_vm3, %v2160_v44, -inf  ;;  %v2164_v47 = vpop.f32.mrb[6].mxu1 }
 0x11d   :  { %744 = vmax.xlane.f32.xlu1 %v743_v43  ;;  %747 = vmax.xlane.f32.xlu0 %v746_v46  ;;  %v1773_v48 = vpop.f32.mrb[7].mxu1  ;;  %v749_v49 = vsel %vm727_vm3, %v2164_v47, -inf }
 0x121   :  { %750 = vmax.xlane.f32.xlu1 %v749_v49 }
 0x19e   :  { %v730_v52 = vpop.xlane.xlu0 %729 }
 0x19f   :  { %v2171_v53 = vmax.f32 %v2168_v51, %v730_v52 }
 0x1a1   :  { %v760_v56 = vsub.f32 %v2168_v51, %v2171_v53  ;;  %1569 = vst.msk [vmem:[#allocation2] sm:$0xff] %vm60_vm2, %v2171_v53  ;;  %786 = vperm.xlu0 %1824, %v2171_v53  }
 0x1a2   :  { %v733_v57 = vpop.xlane.xlu0 %732  ;;  %v736_v58 = vpop.xlane.xlu1 %735 }
 0x1a3   :  { %v2183_v59 = vmax.f32 %v2173_v54, %v733_v57  ;;  %v2186_v60 = vmax.f32 %v2175_v55, %v736_v58 }
 0x1a5   :  { %v761_v63 = vsub.f32 %v2173_v54, %v2183_v59  ;;  %1570 = vst.msk [vmem:[#allocation2 + $0x8] sm:$0xff] %vm60_vm2, %v2183_v59  ;;  %791 = vperm.xlu1 %1825, %v2183_v59   ;;  %v762_v1 = vsub.f32 %v2175_v55, %v2186_v60  ;;  %1571 = vst.msk [vmem:[#allocation2 + $0x10] sm:$0xff] %vm60_vm2, %v2186_v60 }
 0x1a6   :  { %v739_v2 = vpop.xlane.xlu1 %738  ;;  %v742_v3 = vpop.xlane.xlu0 %741 }
 0x1a7   :  { %v2202_v4 = vmax.f32 %v2188_v61, %v739_v2  ;;  %v2205_v5 = vmax.f32 %v2190_v62, %v742_v3 }
 0x1a9   :  { %796 = vperm.xlu1 %1825, %v2186_v60   ;;  %v763_v8 = vsub.f32 %v2188_v61, %v2202_v4  ;;  %1572 = vst.msk [vmem:[#allocation2 + $0x18] sm:$0xff] %vm60_vm2, %v2202_v4  ;;  %v764_v9 = vsub.f32 %v2190_v62, %v2205_v5  ;;  %1573 = vst.msk [vmem:[#allocation2 + $0x20] sm:$0xff] %vm60_vm2, %v2205_v5 }
 0x1aa   :  { %v745_v10 = vpop.xlane.xlu1 %744  ;;  %v748_v11 = vpop.xlane.xlu0 %747 }
 0x1ab   :  { %v2221_v12 = vmax.f32 %v2207_v6, %v745_v10  ;;  %v2224_v13 = vmax.f32 %v2209_v7, %v748_v11  ;;  %v776_v54 = vmul.f32 1.442695, %v764_v9 }
 0x1ad   :  { %801 = vperm.xlu1 %1825, %v2202_v4   ;;  %v765_v15 = vsub.f32 %v2207_v6, %v2221_v12  ;;  %1574 = vst.msk [vmem:[#allocation2 + $0x28] sm:$0xff] %vm60_vm2, %v2221_v12  ;;  %v766_v16 = vsub.f32 %v2209_v7, %v2224_v13  ;;  %1575 = vst.msk [vmem:[#allocation2 + $0x30] sm:$0xff] %vm60_vm2, %v2224_v13 }
 0x1ae   :  { %v751_v17 = vpop.xlane.xlu1 %750 }
 0x1af   :  { %v2238_v19 = vmax.f32 %v2226_v14, %v751_v17  ;;  %v778_v51 = vmul.f32 1.442695, %v765_v15  ;;  %v780_v53 = vmul.f32 1.442695, %v766_v16 }
 0x1b1   :  { %806 = vperm.xlu1 %1825, %v2205_v5   ;;  %v767_v20 = vsub.f32 %v2226_v14, %v2238_v19  ;;  %1576 = vst.msk [vmem:[#allocation2 + $0x38] sm:$0xff] %vm60_vm2, %v2238_v19  ;;  %v848_v5 = vld [vmem:[#allocation3] sm:$0xff]  ;;  %v850_v14 = vld [vmem:[#allocation3 + $0x10] sm:$0xff] }
 0x1b3   :  { %v782_v55 = vmul.f32 1.442695, %v767_v20  ;;  %v851_v20 = vld [vmem:[#allocation3 + $0x18] sm:$0xff] }
 0x1b5   :  { %811 = vperm.xlu1 %1825, %v2221_v12  }
 0x1b9   :  { %816 = vperm.xlu1 %1825, %v2224_v13  }
 0x1bd   :  { %821 = vperm.xlu1 %1825, %v2238_v19  }
 0x220   :  { %v787_v22 = vpop.permute.xlu0 %786 }
 0x221   :  { %v824_v23 = vsub.f32 %v2136_v26, %v787_v22 }
 0x223   :  { %v832_v24 = vmul.f32 1.442695, %v824_v23 }
 0x224   :  { %v792_v25 = vpop.permute.xlu1 %791 }
 0x225   :  { %1826 = vpow2.f32 %v832_v24  ;;  %v825_v28 = vsub.f32 %v2138_v27, %v792_v25 }
 0x227   :  { %v834_v29 = vmul.f32 1.442695, %v825_v28 }
 0x228   :  { %v797_v30 = vpop.permute.xlu1 %796 }
 0x229   :  { %1828 = vpow2.f32 %v834_v29  ;;  %v826_v31 = vsub.f32 %v2144_v32, %v797_v30  ;;  %v964_v32 = vld [vmem:[#allocation10 + $0x18] sm:$0xff] }
 0x22b   :  { %v836_v33 = vmul.f32 1.442695, %v826_v31  ;;  %v770_v31 = vmul.f32 1.442695, %v761_v63 }
 0x22c   :  { %v802_v34 = vpop.permute.xlu1 %801 }
 0x22d   :  { %1830 = vpow2.f32 %v836_v33  ;;  %v827_v36 = vsub.f32 %v2148_v35, %v802_v34  ;;  %v772_v33 = vmul.f32 1.442695, %v762_v1  ;;  %v774_v34 = vmul.f32 1.442695, %v763_v8  ;;  %v849_v8 = vld [vmem:[#allocation3 + $0x8] sm:$0xff] }
 0x22f   :  { %v1827_v39 = vpop.eup %1826  ;;  %v838_v40 = vmul.f32 1.442695, %v827_v36 }
 0x230   :  { %v807_v42 = vpop.permute.xlu1 %806  ;;  %1777 = vmatmul.mubr.msk.f32.vlgmr.msra.gmra.mrb[8].mxu0 %vm727_vm3, %v1827_v39  ;;  %v864_v26 = vsel %vm727_vm3, %v1827_v39, 0.0 }
 0x231   :  { %1832 = vpow2.f32 %v838_v40  ;;  %v828_v27 = vsub.f32 %v2152_v38, %v807_v42  ;;  %865 = vadd.xlane.f32.xlu1 %v864_v26  ;;  %1785 = vmatpush3.msra.mxu0 %v963_v37  ;;  %v965_v38 = vld [vmem:[#allocation10 + $0x20] sm:$0xff] }
 0x232   :  { %1786 = vmatprep.mubr.msk.f32.mxu0 %vm1974_vm1, %v1973_v0  ;;  %1794 = vmatprep.subr.mxu0 %v1973_v0  ;;  %v852_v42 = vld [vmem:[#allocation3 + $0x20] sm:$0xff] }
 0x233   :  { %v1829_v35 = vpop.eup %1828  ;;  %v840_v43 = vmul.f32 1.442695, %v828_v27 }
 0x234   :  { %1782 = vmatmul.mubr.msk.f32.vlgmr.msra.gmra.mrb[8].mxu1 %vm727_vm3, %v1829_v35  ;;  %v812_v45 = vpop.permute.xlu1 %811  ;;  %v867_v46 = vsel %vm727_vm3, %v1829_v35, 0.0 }
 0x235   :  { %1834 = vpow2.f32 %v840_v43  ;;  %v829_v48 = vsub.f32 %v2156_v41, %v812_v45  ;;  %868 = vadd.xlane.f32.xlu0 %v867_v46  ;;  %1790 = vmatpush3.msra.mxu1 %v964_v32  ;;  %v966_v41 = vld [vmem:[#allocation10 + $0x28] sm:$0xff] }
 0x236   :  { %1791 = vmatprep.mubr.msk.f32.mxu1 %vm1974_vm1, %v1973_v0  ;;  %1799 = vmatprep.subr.mxu1 %v1973_v0  ;;  %v853_v43 = vld [vmem:[#allocation3 + $0x28] sm:$0xff] }
 0x237   :  { %v1831_v49 = vpop.eup %1830  ;;  %v842_v50 = vmul.f32 1.442695, %v829_v48 }
 0x238   :  { %v817_v52 = vpop.permute.xlu1 %816  ;;  %1787 = vmatmul.mubr.msk.f32.vlgmr.msra.gmra.mrb[10].mxu0 %vm727_vm3, %v1831_v49  ;;  %v870_v57 = vsel %vm727_vm3, %v1831_v49, 0.0  ;;  %v854_v49 = vld [vmem:[#allocation3 + $0x30] sm:$0xff] }
 0x239   :  { %1836 = vpow2.f32 %v842_v50  ;;  %v830_v58 = vsub.f32 %v2160_v44, %v817_v52  ;;  %871 = vadd.xlane.f32.xlu0 %v870_v57  ;;  %1795 = vmatpush3.msra.mxu0 %v965_v38  ;;  %v967_v44 = vld [vmem:[#allocation10 + $0x30] sm:$0xff] }
 0x23a   :  { %1796 = vmatprep.mubr.msk.f32.mxu0 %vm1974_vm1, %v1973_v0  ;;  %1804 = vmatprep.subr.mxu0 %v1973_v0 }
 0x23b   :  { %v1833_v2 = vpop.eup %1832  ;;  %v844_v3 = vmul.f32 1.442695, %v830_v58 }
 0x23c   :  { %1792 = vmatmul.mubr.msk.f32.vlgmr.msra.gmra.mrb[10].mxu1 %vm727_vm3, %v1833_v2  ;;  %v822_v10 = vpop.permute.xlu1 %821  ;;  %v873_v11 = vsel %vm727_vm3, %v1833_v2, 0.0  ;;  %v855_v2 = vld [vmem:[#allocation3 + $0x38] sm:$0xff] }
 0x23d   :  { %1838 = vpow2.f32 %v844_v3  ;;  %v831_v17 = vsub.f32 %v2164_v47, %v822_v10  ;;  %874 = vadd.xlane.f32.xlu1 %v873_v11  ;;  %1800 = vmatpush3.msra.mxu1 %v966_v41  ;;  %v968_v47 = vld [vmem:[#allocation10 + $0x38] sm:$0xff] }
 0x23e   :  { %1801 = vmatprep.mubr.msk.f32.mxu1 %vm1974_vm1, %v1973_v0  ;;  %1809 = vmatprep.subr.mxu1 %v1973_v0 }
 0x23f   :  { %v1835_v18 = vpop.eup %1834  ;;  %v846_v21 = vmul.f32 1.442695, %v831_v17 }
 0x240   :  { %1797 = vmatmul.mubr.msk.f32.vlgmr.msra.gmra.mrb[12].mxu0 %vm727_vm3, %v1835_v18  ;;  %v876_v22 = vsel %vm727_vm3, %v1835_v18, 0.0 }
 0x241   :  { %1840 = vpow2.f32 %v846_v21  ;;  %877 = vadd.xlane.f32.xlu0 %v876_v22  ;;  %1805 = vmatpush3.msra.mxu0 %v967_v44 }
 0x242   :  { %1806 = vmatprep.mubr.msk.f32.mxu0 %vm1974_vm1, %v1973_v0  ;;  %1842 = vpow2.f32 %v770_v31  ;;  %v905_v31 = vld [vmem:[#allocation4] sm:$0xff] }
 0x243   :  { %v1837_v23 = vpop.eup %1836 }
 0x244   :  { %1802 = vmatmul.mubr.msk.f32.vlgmr.msra.gmra.mrb[12].mxu1 %vm727_vm3, %v1837_v23  ;;  %v879_v24 = vsel %vm727_vm3, %v1837_v23, 0.0 }
 0x245   :  { %880 = vadd.xlane.f32.xlu1 %v879_v24  ;;  %1810 = vmatpush3.msra.mxu1 %v968_v47 }
 0x246   :  { %1811 = vmatprep.mubr.msk.f32.mxu1 %vm1974_vm1, %v1973_v0  ;;  %v768_v0 = vmul.f32 1.442695, %v760_v56 }
 0x247   :  { %v1839_v25 = vpop.eup %1838 }
 0x248   :  { %1807 = vmatmul.mubr.msk.f32.vlgmr.msra.gmra.mrb[14].mxu0 %vm727_vm3, %v1839_v25  ;;  %v882_v28 = vsel %vm727_vm3, %v1839_v25, 0.0  ;;  %1844 = vpow2.f32 %v768_v0 }
 0x249   :  { %883 = vadd.xlane.f32.xlu0 %v882_v28  ;;  %1846 = vpow2.f32 %v772_v33 }
 0x24a   :  { %1848 = vpow2.f32 %v774_v34 }
 0x24b   :  { %v1841_v29 = vpop.eup %1840  ;;  %1850 = vpow2.f32 %v776_v54  ;;  %v906_v54 = vld [vmem:[#allocation4 + $0x8] sm:$0xff] }
 0x24c   :  { %1812 = vmatmul.mubr.msk.f32.vlgmr.msra.gmra.mrb[14].mxu1 %vm727_vm3, %v1841_v29  ;;  %v885_v30 = vsel %vm727_vm3, %v1841_v29, 0.0  ;;  %1852 = vpow2.f32 %v778_v51  ;;  %v1843_v56 = vpop.eup %1842 }
 0x24d   :  { %886 = vadd.xlane.f32.xlu1 %v885_v30  ;;  %1854 = vpow2.f32 %v780_v53  ;;  %v857_v12 = vmul.f32 %v1843_v56, %v849_v8 }
 0x24e   :  { %1856 = vpow2.f32 %v782_v55 }
 0x252   :  { %v1845_v59 = vpop.eup %1844 }
 0x253   :  { %v1847_v60 = vpop.eup %1846  ;;  %v856_v6 = vmul.f32 %v1845_v59, %v848_v5 }
 0x254   :  { %v1849_v61 = vpop.eup %1848  ;;  %v858_v16 = vmul.f32 %v1847_v60, %v850_v14 }
 0x255   :  { %v1851_v62 = vpop.eup %1850  ;;  %v859_v39 = vmul.f32 %v1849_v61, %v851_v20  ;;  %v910_v20 = vld [vmem:[#allocation4 + $0x28] sm:$0xff] }
 0x256   :  { %v1853_v63 = vpop.eup %1852  ;;  %v860_v32 = vmul.f32 %v1851_v62, %v852_v42 }
 0x257   :  { %v1855_v1 = vpop.eup %1854  ;;  %v861_v48 = vmul.f32 %v1853_v63, %v853_v43 }
 0x258   :  { %v1857_v4 = vpop.eup %1856  ;;  %v862_v58 = vmul.f32 %v1855_v1, %v854_v49 }
 0x259   :  { %v863_v17 = vmul.f32 %v1857_v4, %v855_v2 }
 0x25e   :  { %920 = vperm.xlu1 %1825, %v1843_v56  }
 0x25f   :  { %915 = vperm.xlu0 %1824, %v1845_v59   ;;  %v907_v59 = vld [vmem:[#allocation4 + $0x10] sm:$0xff] }
 0x262   :  { %925 = vperm.xlu1 %1825, %v1847_v60  }
 0x263   :  { %930 = vperm.xlu0 %1824, %v1849_v61  }
 0x266   :  { %935 = vperm.xlu1 %1825, %v1851_v62  }
 0x267   :  { %940 = vperm.xlu0 %1824, %v1853_v63  }
 0x26a   :  { %945 = vperm.xlu1 %1825, %v1855_v1  }
 0x26b   :  { %950 = vperm.xlu0 %1824, %v1857_v4   ;;  %v908_v4 = vld [vmem:[#allocation4 + $0x18] sm:$0xff] }
 0x2be   :  { %v866_v7 = vpop.xlane.xlu1 %865 }
 0x2bf   :  { %v888_v9 = vadd.f32 %v866_v7, %v856_v6 }
 0x2c1   :  { %897 = vst.msk [vmem:[#allocation3] sm:$0xff] %vm60_vm2, %v888_v9 }
 0x2c2   :  { %v869_v13 = vpop.xlane.xlu0 %868 }
 0x2c3   :  { %v889_v15 = vadd.f32 %v869_v13, %v857_v12  ;;  %v909_v12 = vld [vmem:[#allocation4 + $0x20] sm:$0xff] }
 0x2c5   :  { %898 = vst.msk [vmem:[#allocation3 + $0x8] sm:$0xff] %vm60_vm2, %v889_v15 }
 0x2c6   :  { %v872_v19 = vpop.xlane.xlu0 %871 }
 0x2c7   :  { %v890_v36 = vadd.f32 %v872_v19, %v858_v16 }
 0x2c8   :  { %v1580_v37 = vld [vmem:[#allocation3] sm:$0xff] }
 0x2c9   :  { %899 = vst.msk [vmem:[#allocation3 + $0x10] sm:$0xff] %vm60_vm2, %v890_v36  ;;  %1858 = vrcp.f32 %v1580_v37 }
 0x2ca   :  { %v875_v40 = vpop.xlane.xlu1 %874 }
 0x2cb   :  { %v891_v26 = vadd.f32 %v875_v40, %v859_v39 }
 0x2cc   :  { %v1581_v27 = vld [vmem:[#allocation3 + $0x8] sm:$0xff] }
 0x2cd   :  { %900 = vst.msk [vmem:[#allocation3 + $0x18] sm:$0xff] %vm60_vm2, %v891_v26  ;;  %1860 = vrcp.f32 %v1581_v27  ;;  %v911_v26 = vld [vmem:[#allocation4 + $0x30] sm:$0xff] }
 0x2ce   :  { %v878_v35 = vpop.xlane.xlu0 %877 }
 0x2cf   :  { %v892_v45 = vadd.f32 %v878_v35, %v860_v32 }
 0x2d0   :  { %v1582_v46 = vld [vmem:[#allocation3 + $0x10] sm:$0xff] }
 0x2d1   :  { %901 = vst.msk [vmem:[#allocation3 + $0x20] sm:$0xff] %vm60_vm2, %v892_v45  ;;  %1862 = vrcp.f32 %v1582_v46  ;;  %v912_v46 = vld [vmem:[#allocation4 + $0x38] sm:$0xff] }
 0x2d2   :  { %v881_v38 = vpop.xlane.xlu1 %880 }
 0x2d3   :  { %v1859_v50 = vpop.eup %1858  ;;  %v893_v52 = vadd.f32 %v881_v38, %v861_v48 }
 0x2d4   :  { %1606 = vperm.xlu1 %1825, %v1859_v50   ;;  %v1583_v57 = vld [vmem:[#allocation3 + $0x18] sm:$0xff] }
 0x2d5   :  { %902 = vst.msk [vmem:[#allocation3 + $0x28] sm:$0xff] %vm60_vm2, %v893_v52  ;;  %1864 = vrcp.f32 %v1583_v57 }
 0x2d6   :  { %v884_v41 = vpop.xlane.xlu0 %883 }
 0x2d7   :  { %v1861_v3 = vpop.eup %1860  ;;  %v894_v10 = vadd.f32 %v884_v41, %v862_v58 }
 0x2d8   :  { %1611 = vperm.xlu0 %1824, %v1861_v3   ;;  %v1584_v11 = vld [vmem:[#allocation3 + $0x20] sm:$0xff] }
 0x2d9   :  { %903 = vst.msk [vmem:[#allocation3 + $0x30] sm:$0xff] %vm60_vm2, %v894_v10  ;;  %1866 = vrcp.f32 %v1584_v11 }
 0x2da   :  { %v887_v44 = vpop.xlane.xlu1 %886 }
 0x2db   :  { %v1863_v18 = vpop.eup %1862  ;;  %v895_v21 = vadd.f32 %v887_v44, %v863_v17 }
 0x2dc   :  { %1616 = vperm.xlu1 %1825, %v1863_v18   ;;  %v1585_v22 = vld [vmem:[#allocation3 + $0x28] sm:$0xff] }
 0x2dd   :  { %904 = vst.msk [vmem:[#allocation3 + $0x38] sm:$0xff] %vm60_vm2, %v895_v21  ;;  %1868 = vrcp.f32 %v1585_v22 }
 0x2de   :  { %v916_v0 = vpop.permute.xlu0 %915  ;;  %v921_v33 = vpop.permute.xlu1 %920 }
 0x2df   :  { %v1865_v47 = vpop.eup %1864  ;;  %v953_v34 = vmul.f32 %v916_v0, %v905_v31  ;;  %v954_v56 = vmul.f32 %v921_v33, %v906_v54 }
 0x2e0   :  { %1621 = vperm.xlu0 %1824, %v1865_v47   ;;  %v1586_v23 = vld [vmem:[#allocation3 + $0x30] sm:$0xff] }
 0x2e1   :  { %1870 = vrcp.f32 %v1586_v23 }
 0x2e2   :  { %v926_v60 = vpop.permute.xlu1 %925  ;;  %v931_v5 = vpop.permute.xlu0 %930 }
 0x2e3   :  { %v1867_v24 = vpop.eup %1866  ;;  %v955_v1 = vmul.f32 %v926_v60, %v907_v59  ;;  %v956_v9 = vmul.f32 %v931_v5, %v908_v4 }
 0x2e4   :  { %1626 = vperm.xlu1 %1825, %v1867_v24   ;;  %v1587_v25 = vld [vmem:[#allocation3 + $0x38] sm:$0xff] }
 0x2e5   :  { %1872 = vrcp.f32 %v1587_v25 }
 0x2e6   :  { %v936_v13 = vpop.permute.xlu1 %935  ;;  %v941_v36 = vpop.permute.xlu0 %940 }
 0x2e7   :  { %v1869_v28 = vpop.eup %1868  ;;  %v957_v19 = vmul.f32 %v936_v13, %v909_v12  ;;  %v958_v42 = vmul.f32 %v941_v36, %v910_v20 }
 0x2e8   :  { %1631 = vperm.xlu0 %1824, %v1869_v28  }
 0x2ea   :  { %v946_v27 = vpop.permute.xlu1 %945  ;;  %v951_v48 = vpop.permute.xlu0 %950 }
 0x2eb   :  { %v1871_v29 = vpop.eup %1870  ;;  %v959_v45 = vmul.f32 %v946_v27, %v911_v26  ;;  %v960_v52 = vmul.f32 %v951_v48, %v912_v46 }
 0x2ec   :  { %1636 = vperm.xlu1 %1825, %v1871_v29  }
 0x2ef   :  { %v1873_v30 = vpop.eup %1872 }
 0x2f0   :  { %1641 = vperm.xlu0 %1824, %v1873_v30  }
 0x303   :  { %v1038_v51 = vpop.f32.mrb[8].mxu0 }
 0x304   :  { %v1553_v53 = vadd.f32 %v1038_v51, %v953_v34  ;;  %v1778_v55 = vpop.f32.mrb[9].mxu0 }
 0x306   :  { %1561 = vst.msk [vmem:[#allocation4] sm:$0xff] %vm77_vm0, %v1553_v53 }
 0x307   :  { %v1111_v61 = vpop.f32.mrb[8].mxu1 }
 0x308   :  { %v1554_v62 = vadd.f32 %v1111_v61, %v954_v56  ;;  %v1783_v63 = vpop.f32.mrb[9].mxu1 }
 0x30a   :  { %1562 = vst.msk [vmem:[#allocation4 + $0x8] sm:$0xff] %vm77_vm0, %v1554_v62 }
 0x30b   :  { %v1184_v6 = vpop.f32.mrb[10].mxu0 }
 0x30c   :  { %v1555_v7 = vadd.f32 %v1184_v6, %v955_v1  ;;  %v1788_v8 = vpop.f32.mrb[11].mxu0 }
 0x30d   :  { %v1596_v2 = vld [vmem:[#allocation4] sm:$0xff] }
 0x30e   :  { %1563 = vst.msk [vmem:[#allocation4 + $0x10] sm:$0xff] %vm77_vm0, %v1555_v7 }
 0x30f   :  { %v1257_v14 = vpop.f32.mrb[10].mxu1 }
 0x310   :  { %v1556_v15 = vadd.f32 %v1257_v14, %v956_v9  ;;  %v1793_v16 = vpop.f32.mrb[11].mxu1 }
 0x311   :  { %v1597_v11 = vld [vmem:[#allocation4 + $0x8] sm:$0xff] }
 0x312   :  { %1564 = vst.msk [vmem:[#allocation4 + $0x18] sm:$0xff] %vm77_vm0, %v1556_v15 }
 0x313   :  { %v1330_v37 = vpop.f32.mrb[12].mxu0 }
 0x314   :  { %v1557_v39 = vadd.f32 %v1330_v37, %v957_v19  ;;  %v1798_v40 = vpop.f32.mrb[13].mxu0 }
 0x315   :  { %v1598_v18 = vld [vmem:[#allocation4 + $0x10] sm:$0xff] }
 0x316   :  { %1565 = vst.msk [vmem:[#allocation4 + $0x20] sm:$0xff] %vm77_vm0, %v1557_v39 }
 0x317   :  { %v1403_v32 = vpop.f32.mrb[12].mxu1 }
 0x318   :  { %v1558_v35 = vadd.f32 %v1403_v32, %v958_v42  ;;  %v1803_v43 = vpop.f32.mrb[13].mxu1 }
 0x319   :  { %v1599_v47 = vld [vmem:[#allocation4 + $0x18] sm:$0xff] }
 0x31a   :  { %1566 = vst.msk [vmem:[#allocation4 + $0x28] sm:$0xff] %vm77_vm0, %v1558_v35 }
 0x31b   :  { %v1476_v38 = vpop.f32.mrb[14].mxu0 }
 0x31c   :  { %v1559_v49 = vadd.f32 %v1476_v38, %v959_v45  ;;  %v1808_v50 = vpop.f32.mrb[15].mxu0 }
 0x31d   :  { %v1600_v25 = vld [vmem:[#allocation4 + $0x20] sm:$0xff] }
 0x31e   :  { %1567 = vst.msk [vmem:[#allocation4 + $0x30] sm:$0xff] %vm77_vm0, %v1559_v49 }
 0x31f   :  { %v1549_v57 = vpop.f32.mrb[14].mxu1 }
 0x320   :  { %v1560_v58 = vadd.f32 %v1549_v57, %v960_v52  ;;  %v1813_v41 = vpop.f32.mrb[15].mxu1 }
 0x321   :  { %v1601_v30 = vld [vmem:[#allocation4 + $0x28] sm:$0xff] }
 0x322   :  { %1568 = vst.msk [vmem:[#allocation4 + $0x38] sm:$0xff] %vm77_vm0, %v1560_v58 }
 0x325   :  { %v1602_v33 = vld [vmem:[#allocation4 + $0x30] sm:$0xff] }
 0x329   :  { %v1603_v51 = vld [vmem:[#allocation4 + $0x38] sm:$0xff] }
 0x353   :  { %v1607_v3 = vpop.permute.xlu1 %1606 }
 0x354   :  { %v1644_v10 = vmul.f32 %v1607_v3, %v1596_v2 }
 0x356   :  { %1652 = vst.msk [vmem:[#allocation11] sm:$0xff] %vm77_vm0, %v1644_v10 }
 0x357   :  { %v1612_v17 = vpop.permute.xlu0 %1611 }
 0x358   :  { %v1645_v44 = vmul.f32 %v1612_v17, %v1597_v11 }
 0x35a   :  { %1653 = vst.msk [vmem:[#allocation11 + $0x8] sm:$0xff] %vm77_vm0, %v1645_v44 }
 0x35b   :  { %v1617_v21 = vpop.permute.xlu1 %1616 }
 0x35c   :  { %v1646_v22 = vmul.f32 %v1617_v21, %v1598_v18 }
 0x35e   :  { %1654 = vst.msk [vmem:[#allocation11 + $0x10] sm:$0xff] %vm77_vm0, %v1646_v22 }
 0x35f   :  { %v1622_v23 = vpop.permute.xlu0 %1621 }
 0x360   :  { %v1647_v24 = vmul.f32 %v1622_v23, %v1599_v47 }
 0x362   :  { %1655 = vst.msk [vmem:[#allocation11 + $0x18] sm:$0xff] %vm77_vm0, %v1647_v24 }
 0x363   :  { %v1627_v28 = vpop.permute.xlu1 %1626 }
 0x364   :  { %v1648_v29 = vmul.f32 %v1627_v28, %v1600_v25 }
 0x366   :  { %1656 = vst.msk [vmem:[#allocation11 + $0x20] sm:$0xff] %vm77_vm0, %v1648_v29 }
 0x367   :  { %v1632_v31 = vpop.permute.xlu0 %1631 }
 0x368   :  { %v1649_v0 = vmul.f32 %v1632_v31, %v1601_v30 }
 0x36a   :  { %1657 = vst.msk [vmem:[#allocation11 + $0x28] sm:$0xff] %vm77_vm0, %v1649_v0 }
 0x36b   :  { %v1637_v34 = vpop.permute.xlu1 %1636 }
 0x36c   :  { %v1650_v54 = vmul.f32 %v1637_v34, %v1602_v33 }
 0x36e   :  { %1658 = vst.msk [vmem:[#allocation11 + $0x30] sm:$0xff] %vm77_vm0, %v1650_v54 }
 0x36f   :  { %v1642_v53 = vpop.permute.xlu0 %1641 }
 0x370   :  { %v1651_v55 = vmul.f32 %v1642_v53, %v1603_v51 }
 0x372   :  { %1659 = vst.msk [vmem:[#allocation11 + $0x38] sm:$0xff] %vm77_vm0, %v1651_v55 }
 0x373   :  { %1951 = shalt.err (!%p1948_p0)
}
 0x374   :  { %s1952_s27 = scalar_lea.hbm %s2356_s3, 1024 }
 0x375   :  { %p1953_p1 = scmp.ne.s32.totalorder %s2356_s3, %s1952_s27  ;;  %p1956_p2 = scmp.lt.u32.totalorder %s1952_s27, %s2356_s3 }
 0x377   :  { %p1958_p3 = pnand %p1956_p2, %p1953_p1 }
 0x379   :  { %1961 = shalt.err (!%p1958_p3)
}
 0x37a   :  { %1671 = dma.vmem_to_hbm [thread:$0]  %s1666_s21, 1024, %s2356_s3, [#allocation7], %s1970_s24, %s1970_s24, %s1971_s25  }
 0x37b   :  { %1966 = dma.done.wait [#allocation7], 1024  }
 0x37c   :  { %1967 = vsyncadd [#allocation7], 4294966272 }
 0x37d   :  { %1675 = vsyncpa [#allocation6], 1 }
 0x37e   :  { %1676 = vsyncpa [#allocation9], 1 }
 0x37f   :  { %1677 = vsyncpa [#allocation7], 1 }

</bundles_post_ra>
